<compile_context>
chip_gen: v6e
topology: v6e:2x2x1
jax: 0.10.0
libtpu: 0.0.40
codegen_flags: <defaults>
</compile_context>

<pallas_src>
import functools

import numpy as np

import jax
import jax.numpy as jnp
from jax import lax
from jax.experimental import pallas as pl
from jax.experimental.pallas import tpu as pltpu


def _round_up(x, m):
    return (x + m - 1) // m * m


# -----------------------------------------------------------------------------
# Kernel 1: fused Conv2d(+bias) -> ReLU (+ per-sample BN partial stats).
# One grid step per batch sample ("parallel" -> megacore-friendly).
# -----------------------------------------------------------------------------
def _conv_relu_stats_kernel(x_ref, w_ref, mask_ref, *refs,
                            shifts, cin, kkc, kkc_pad, batchnorm):
    """
    x_ref    : (1, Cin, H*W)        bf16   raw activations for sample n
    w_ref    : (Cout_pad, KKC_pad)  bf16   flat weights; col KKC = bias, rest 0
    mask_ref : (K*K, H*W)           f32    static 0/1 zero-padding masks per tap
    o_ref    : (1, Cout_pad, H*W)   f32    conv+ReLU output (NCHW-flattened)
    stats_ref: (1, Cout_pad, 2)     f32    per-sample [sum, sum_sq]  (BN only)
    patches  : (KKC_pad, H*W)       f32    VMEM scratch: in-kernel im2col matrix
    """
    if batchnorm:
        o_ref, stats_ref, patches = refs
    else:
        o_ref, patches = refs
        stats_ref = None

    hw = x_ref.shape[-1]
    x = x_ref[0].astype(jnp.float32)                       # (Cin, H*W)

    # In-kernel im2col: tap (kh, kw) == cyclic lane shift of the flattened
    # H*W axis followed by a static boundary mask (realizes the zero padding).
    # The shift is two static lane slices + concat (explicit, unambiguous);
    # all copies stay in VMEM -- no HBM amplification.
    for t, s in enumerate(shifts):
        xs = x if s == 0 else jnp.concatenate([x[:, s:], x[:, :s]], axis=1)
        patches[pl.ds(t * cin, cin), :] = xs * mask_ref[pl.ds(t, 1), :]

    # Bias row (all ones) + zero rows padding the depth to a multiple of 8.
    patches[pl.ds(kkc, 1), :] = jnp.ones((1, hw), jnp.float32)
    tail = kkc_pad - kkc - 1
    if tail:
        patches[pl.ds(kkc + 1, tail), :] = jnp.zeros((tail, hw), jnp.float32)

    # Single MXU contraction: bf16 operands, f32 accumulation.
    y = jnp.dot(w_ref[...], patches[...].astype(jnp.bfloat16),
                preferred_element_type=jnp.float32)        # (Cout_pad, H*W)
    y = jnp.maximum(y, 0.0)                                # ReLU
    o_ref[0] = y

    if batchnorm:
        # Per-sample partial stats (lane-axis reductions ride the XLU slot).
        s1 = jnp.sum(y, axis=1, keepdims=True)
        s2 = jnp.sum(y * y, axis=1, keepdims=True)
        stats_ref[0] = jnp.concatenate([s1, s2], axis=1)   # (Cout_pad, 2)


# -----------------------------------------------------------------------------
# Kernel 2: BatchNorm finalize (normalization pass), aliased in place.
# -----------------------------------------------------------------------------
def _bn_normalize_kernel(y_ref, mean_ref, inv_ref, o_ref):
    o_ref[0] = (y_ref[0] - mean_ref[...]) * inv_ref[...]


def simpleblock_forward(x_nchw, weight, bias, *, ksize, pad, batchnorm,
                        eps=1e-5):
    """Forward of `simpleblock`: Conv2d(stride=1) -> ReLU -> [BatchNorm2d].

    BatchNorm matches a freshly-initialized, training-mode nn.BatchNorm2d
    (biased batch stats, gamma=1, beta=0, eps=1e-5).
    """
    # TODO(synk): eval-mode running stats / learned affine BN params are not
    # modeled (the PyTorch module uses BatchNorm2d defaults right after init).
    N, Cin, H, W = x_nchw.shape
    Cout = weight.shape[0]
    K = ksize
    Ho = H + 2 * pad - K + 1
    Wo = W + 2 * pad - K + 1
    if (Ho, Wo) != (H, W):
        # TODO(synk): general ksize/pad geometry needs a padded-grid variant of
        # the in-kernel im2col; only 'same' conv (2*pad == ksize-1) is fused.
        raise NotImplementedError("in-kernel im2col requires 2*pad == ksize-1")

    HW = H * W
    KK = K * K
    KKC = KK * Cin
    KKC_pad = _round_up(KKC + 1, 8)           # +1 ones row carrying the bias
    Cout_pad = _round_up(Cout, 8)             # full 8-sublane output tiles

    # --- bf16 operands (halved HBM traffic); f32 accumulation in the kernel --
    x_flat = x_nchw.reshape(N, Cin, HW).astype(jnp.bfloat16)   # free reshape

    w_flat = jnp.transpose(weight, (0, 2, 3, 1)).reshape(Cout, KKC)
    w_aug = jnp.concatenate(
        [w_flat, bias.reshape(Cout, 1),
         jnp.zeros((Cout, KKC_pad - KKC - 1), w_flat.dtype)], axis=1)
    w_aug = jnp.concatenate(
        [w_aug, jnp.zeros((Cout_pad - Cout, KKC_pad), w_aug.dtype)], axis=0)
    w_aug = w_aug.astype(jnp.bfloat16)                          # (Cout_pad, KKC_pad)

    # --- static per-tap shift amounts and zero-padding masks -----------------
    offs = [(kh - pad, kw - pad) for kh in range(K) for kw in range(K)]
    # patches[row, p] must hold x[cin, p + dh*W + dw]; concat(x[:,s:], x[:,:s])
    # gives x[:, (p + s) mod HW], so s = (dh*W + dw) mod HW.
    shifts = tuple(int((dh * W + dw) % HW) for (dh, dw) in offs)
    oh = np.arange(H).reshape(H, 1)
    ow = np.arange(W).reshape(1, W)
    masks = np.stack(
        [((oh + dh >= 0) & (oh + dh < H) & (ow + dw >= 0) & (ow + dw < W))
         for (dh, dw) in offs]).astype(np.float32).reshape(KK, HW)
    masks = jnp.asarray(masks)

    # --- VMEM budget sized to need (double-buffered blocks + scratch) --------
    blk_bytes = (Cin * HW * 2 + Cout_pad * KKC_pad * 2 + KK * HW * 4
                 + Cout_pad * HW * 4 + (Cout_pad * 2 * 4 if batchnorm else 0))
    vmem1 = int(2 * blk_bytes + KKC_pad * HW * 4 + (2 << 20))

    kernel1 = functools.partial(
        _conv_relu_stats_kernel, shifts=shifts, cin=Cin, kkc=KKC,
        kkc_pad=KKC_pad, batchnorm=batchnorm)

    in_specs = [
        pl.BlockSpec((1, Cin, HW), lambda n: (n, 0, 0)),        # one sample
        pl.BlockSpec((Cout_pad, KKC_pad), lambda n: (0, 0)),    # weights
        pl.BlockSpec((KK, HW), lambda n: (0, 0)),               # tap masks
    ]
    y_shape = jax.ShapeDtypeStruct((N, Cout_pad, HW), jnp.float32)
    y_spec = pl.BlockSpec((1, Cout_pad, HW), lambda n: (n, 0, 0))
    scratch = [pltpu.VMEM((KKC_pad, HW), jnp.float32)]
    cparams1 = pltpu.CompilerParams(dimension_semantics=("parallel",),
                                    vmem_limit_bytes=vmem1)

    if batchnorm:
        stats_shape = jax.ShapeDtypeStruct((N, Cout_pad, 2), jnp.float32)
        stats_spec = pl.BlockSpec((1, Cout_pad, 2), lambda n: (n, 0, 0))
        conv_out, stats = pl.pallas_call(
            kernel1,
            out_shape=(y_shape, stats_shape),
            grid=(N,),
            in_specs=in_specs,
            out_specs=(y_spec, stats_spec),
            scratch_shapes=scratch,
            compiler_params=cparams1,
        )(x_flat, w_aug, masks)

        # 128-byte finalize math (batch mean / inv_std) on the XLA side; the
        # HBM-sized normalization pass stays in Pallas (kernel 2, in place).
        inv_cnt = 1.0 / float(N * HW)
        tot = jnp.sum(stats, axis=0)                            # (Cout_pad, 2)
        mean = tot[:, 0:1] * inv_cnt
        var = jnp.maximum(tot[:, 1:2] * inv_cnt - mean * mean, 0.0)
        inv_std = lax.rsqrt(var + eps)

        vmem2 = int(2 * (2 * Cout_pad * HW * 4 + 2 * Cout_pad * 4) + (2 << 20))
        out_flat = pl.pallas_call(
            _bn_normalize_kernel,
            out_shape=y_shape,
            grid=(N,),
            in_specs=[y_spec,
                      pl.BlockSpec((Cout_pad, 1), lambda n: (0, 0)),
                      pl.BlockSpec((Cout_pad, 1), lambda n: (0, 0))],
            out_specs=y_spec,
            input_output_aliases={0: 0},   # normalize the conv output in place
            compiler_params=pltpu.CompilerParams(
                dimension_semantics=("parallel",), vmem_limit_bytes=vmem2),
        )(conv_out, mean, inv_std)
    else:
        out_flat = pl.pallas_call(
            kernel1,
            out_shape=y_shape,
            grid=(N,),
            in_specs=in_specs,
            out_specs=y_spec,
            scratch_shapes=scratch,
            compiler_params=cparams1,
        )(x_flat, w_aug, masks)

    # De-pad Cout (free when Cout is already a multiple of 8) and reshape to
    # NCHW -- no transpose: the kernel already wrote NCHW-ordered blocks.
    out = out_flat[:, :Cout, :].reshape(N, Cout, Ho, Wo)
    return out.astype(x_nchw.dtype)


def _reference(x_nchw, weight, bias, *, ksize, pad, batchnorm, eps=1e-5):
    """Pure-JAX reference mirroring the PyTorch module's forward."""
    y = lax.conv_general_dilated(
        x_nchw, weight, window_strides=(1, 1),
        padding=((pad, pad), (pad, pad)),
        dimension_numbers=("NCHW", "OIHW", "NCHW"))
    y = y + bias[None, :, None, None]
    y = jnp.maximum(y, 0.0)
    if batchnorm:
        mean = jnp.mean(y, axis=(0, 2, 3), keepdims=True)
        var = jnp.mean((y - mean) ** 2, axis=(0, 2, 3), keepdims=True)
        y = (y - mean) * lax.rsqrt(var + eps)
    return y


if __name__ == "__main__":
    # The module's BatchNorm2d(input_channel) only works when
    # input_channel == output_channel, so the demo uses Cin == Cout.
    N, Cin, Cout, H, W = 2, 4, 4, 16, 16
    ksize, pad = 3, 1

    key = jax.random.PRNGKey(0)
    kx, kw, kb = jax.random.split(key, 3)
    x = jax.random.normal(kx, (N, Cin, H, W), dtype=jnp.float32)
    weight = 0.1 * jax.random.normal(kw, (Cout, Cin, ksize, ksize),
                                     dtype=jnp.float32)
    bias = 0.1 * jax.random.normal(kb, (Cout,), dtype=jnp.float32)

    # The kernel quantizes operands to bf16 (per perf review) and accumulates
    # in f32, so correctness is asserted against an f32 reference fed the SAME
    # bf16-rounded operands (products are then bit-exact; only the summation
    # order differs, ~1e-6).
    xq = x.astype(jnp.bfloat16).astype(jnp.float32)
    wq = weight.astype(jnp.bfloat16).astype(jnp.float32)
    bq = bias.astype(jnp.bfloat16).astype(jnp.float32)

    fwd = jax.jit(simpleblock_forward,
                  static_argnames=("ksize", "pad", "batchnorm"))

    for batchnorm in (True, False):
        out = fwd(x, weight, bias, ksize=ksize, pad=pad, batchnorm=batchnorm)
        out = jax.block_until_ready(out)
        assert out.shape == (N, Cout, H, W)
        ref = _reference(xq, wq, bq, ksize=ksize, pad=pad, batchnorm=batchnorm)
        err = jnp.max(jnp.abs(out - ref))
        assert jnp.allclose(out, ref, atol=1e-4, rtol=1e-4), (
            f"mismatch (batchnorm={batchnorm}): max abs err {err}")

    print("KERNEL_OK")
</pallas_src>

<mosaic_0001>
module attributes {stable_mosaic.version = 11 : i64} {
  func.func @_bn_normalize_kernel(%arg0: i32, %arg1: memref<1x8x256xf32, #tpu.memory_space<vmem>>, %arg2: memref<8x1xf32, #tpu.memory_space<vmem>>, %arg3: memref<8x1xf32, #tpu.memory_space<vmem>>, %arg4: memref<1x8x256xf32, #tpu.memory_space<vmem>>) attributes {dimension_semantics = [#tpu.dimension_semantics<parallel>], iteration_bounds = array<i64: 2>, scalar_prefetch = 0 : i64, scratch_operands = 0 : i64, tpu.core_type = #tpu.core_type<tc>, window_params = [{transform_indices = @transform_0, window_bounds = array<i64: 1, 8, 256>}, {pipeline_mode = #tpu.pipeline_mode<synchronous>, transform_indices = @transform_1, window_bounds = array<i64: 8, 1>}, {pipeline_mode = #tpu.pipeline_mode<synchronous>, transform_indices = @transform_2, window_bounds = array<i64: 8, 1>}, {transform_indices = @transform_3, window_bounds = array<i64: 1, 8, 256>}]} {
    %c0 = arith.constant 0 : index
    %c0_0 = arith.constant 0 : index
    %c0_1 = arith.constant 0 : index
    %0 = vector.load %arg1[%c0, %c0_0, %c0_1] : memref<1x8x256xf32, #tpu.memory_space<vmem>>, vector<1x8x256xf32>
    %1 = vector.shape_cast %0 : vector<1x8x256xf32> to vector<8x256xf32>
    %c0_2 = arith.constant 0 : index
    %c0_3 = arith.constant 0 : index
    %2 = vector.load %arg2[%c0_2, %c0_3] : memref<8x1xf32, #tpu.memory_space<vmem>>, vector<8x1xf32>
    %3 = vector.broadcast %2 : vector<8x1xf32> to vector<8x256xf32>
    %4 = arith.subf %1, %3 : vector<8x256xf32>
    %c0_4 = arith.constant 0 : index
    %c0_5 = arith.constant 0 : index
    %5 = vector.load %arg3[%c0_4, %c0_5] : memref<8x1xf32, #tpu.memory_space<vmem>>, vector<8x1xf32>
    %6 = vector.broadcast %5 : vector<8x1xf32> to vector<8x256xf32>
    %7 = arith.mulf %4, %6 : vector<8x256xf32>
    %c0_6 = arith.constant 0 : index
    %c0_7 = arith.constant 0 : index
    %c0_8 = arith.constant 0 : index
    %8 = vector.load %arg4[%c0_6, %c0_7, %c0_8] : memref<1x8x256xf32, #tpu.memory_space<vmem>>, vector<1x8x256xf32>
    %9 = vector.shape_cast %8 : vector<1x8x256xf32> to vector<8x256xf32>
    %10 = vector.shape_cast %7 : vector<8x256xf32> to vector<1x8x256xf32>
    tpu.vector_store %arg4[%c0_6, %c0_7, %c0_8], %10 {strides = array<i32>} : memref<1x8x256xf32, #tpu.memory_space<vmem>>, vector<1x8x256xf32>,
    return
  }
  func.func @transform_0(%arg0: i32) -> (i32, i32, i32) {
    %c0_i32 = arith.constant 0 : i32
    %c0_i32_0 = arith.constant 0 : i32
    %c0_i32_1 = arith.constant 0 : i32
    return %arg0, %c0_i32, %c0_i32_0 : i32, i32, i32
  }
  func.func @transform_1(%arg0: i32) -> (i32, i32) {
    %c0_i32 = arith.constant 0 : i32
    %c0_i32_0 = arith.constant 0 : i32
    %c0_i32_1 = arith.constant 0 : i32
    return %c0_i32, %c0_i32_0 : i32, i32
  }
  func.func @transform_2(%arg0: i32) -> (i32, i32) {
    %c0_i32 = arith.constant 0 : i32
    %c0_i32_0 = arith.constant 0 : i32
    %c0_i32_1 = arith.constant 0 : i32
    return %c0_i32, %c0_i32_0 : i32, i32
  }
  func.func @transform_3(%arg0: i32) -> (i32, i32, i32) {
    %c0_i32 = arith.constant 0 : i32
    %c0_i32_0 = arith.constant 0 : i32
    %c0_i32_1 = arith.constant 0 : i32
    return %arg0, %c0_i32, %c0_i32_0 : i32, i32, i32
  }
}

module attributes {stable_mosaic.version = 11 : i64} {
  func.func @_conv_relu_stats_kernel(%arg0: i32, %arg1: memref<1x4x256xbf16, #tpu.memory_space<vmem>>, %arg2: memref<8x40xbf16, #tpu.memory_space<vmem>>, %arg3: memref<9x256xf32, #tpu.memory_space<vmem>>, %arg4: memref<1x8x256xf32, #tpu.memory_space<vmem>>, %arg5: memref<1x8x2xf32, #tpu.memory_space<vmem>>, %arg6: memref<40x256xf32, #tpu.memory_space<vmem>>) attributes {dimension_semantics = [#tpu.dimension_semantics<parallel>], iteration_bounds = array<i64: 2>, scalar_prefetch = 0 : i64, scratch_operands = 1 : i64, tpu.core_type = #tpu.core_type<tc>, window_params = [{transform_indices = @transform_0, window_bounds = array<i64: 1, 4, 256>}, {pipeline_mode = #tpu.pipeline_mode<synchronous>, transform_indices = @transform_1, window_bounds = array<i64: 8, 40>}, {pipeline_mode = #tpu.pipeline_mode<synchronous>, transform_indices = @transform_2, window_bounds = array<i64: 9, 256>}, {transform_indices = @transform_3, window_bounds = array<i64: 1, 8, 256>}, {transform_indices = @transform_4, window_bounds = array<i64: 1, 8, 2>}]} {
    %c0 = arith.constant 0 : index
    %c0_0 = arith.constant 0 : index
    %c0_1 = arith.constant 0 : index
    %0 = vector.load %arg1[%c0, %c0_0, %c0_1] : memref<1x4x256xbf16, #tpu.memory_space<vmem>>, vector<1x4x256xbf16>
    %1 = vector.shape_cast %0 : vector<1x4x256xbf16> to vector<4x256xbf16>
    %2 = arith.extf %1 : vector<4x256xbf16> to vector<4x256xf32>
    %3 = vector.extract_strided_slice %2 {offsets = [0, 239], sizes = [4, 17], strides = [1, 1]} : vector<4x256xf32> to vector<4x17xf32>
    %4 = vector.extract_strided_slice %2 {offsets = [0, 0], sizes = [4, 239], strides = [1, 1]} : vector<4x256xf32> to vector<4x239xf32>
    %5 = tpu.concatenate %3, %4 in 1 : vector<4x17xf32>, vector<4x239xf32> -> vector<4x256xf32>
    %c0_2 = arith.constant 0 : index
    %c0_3 = arith.constant 0 : index
    %6 = vector.load %arg3[%c0_2, %c0_3] : memref<9x256xf32, #tpu.memory_space<vmem>>, vector<1x256xf32>
    %7 = vector.broadcast %6 : vector<1x256xf32> to vector<4x256xf32>
    %8 = arith.mulf %5, %7 : vector<4x256xf32>
    %c0_4 = arith.constant 0 : index
    %c0_5 = arith.constant 0 : index
    %9 = vector.load %arg6[%c0_4, %c0_5] : memref<40x256xf32, #tpu.memory_space<vmem>>, vector<4x256xf32>
    tpu.vector_store %arg6[%c0_4, %c0_5], %8 {strides = array<i32>} : memref<40x256xf32, #tpu.memory_space<vmem>>, vector<4x256xf32>,
    %10 = vector.extract_strided_slice %2 {offsets = [0, 240], sizes = [4, 16], strides = [1, 1]} : vector<4x256xf32> to vector<4x16xf32>
    %11 = vector.extract_strided_slice %2 {offsets = [0, 0], sizes = [4, 240], strides = [1, 1]} : vector<4x256xf32> to vector<4x240xf32>
    %12 = tpu.concatenate %10, %11 in 1 : vector<4x16xf32>, vector<4x240xf32> -> vector<4x256xf32>
    %c1 = arith.constant 1 : index
    %c0_6 = arith.constant 0 : index
    %13 = vector.load %arg3[%c1, %c0_6] : memref<9x256xf32, #tpu.memory_space<vmem>>, vector<1x256xf32>
    %14 = vector.broadcast %13 : vector<1x256xf32> to vector<4x256xf32>
    %15 = arith.mulf %12, %14 : vector<4x256xf32>
    %c4 = arith.constant 4 : index
    %c0_7 = arith.constant 0 : index
    %16 = vector.load %arg6[%c4, %c0_7] : memref<40x256xf32, #tpu.memory_space<vmem>>, vector<4x256xf32>
    tpu.vector_store %arg6[%c4, %c0_7], %15 {strides = array<i32>} : memref<40x256xf32, #tpu.memory_space<vmem>>, vector<4x256xf32>,
    %17 = vector.extract_strided_slice %2 {offsets = [0, 241], sizes = [4, 15], strides = [1, 1]} : vector<4x256xf32> to vector<4x15xf32>
    %18 = vector.extract_strided_slice %2 {offsets = [0, 0], sizes = [4, 241], strides = [1, 1]} : vector<4x256xf32> to vector<4x241xf32>
    %19 = tpu.concatenate %17, %18 in 1 : vector<4x15xf32>, vector<4x241xf32> -> vector<4x256xf32>
    %c2 = arith.constant 2 : index
    %c0_8 = arith.constant 0 : index
    %20 = vector.load %arg3[%c2, %c0_8] : memref<9x256xf32, #tpu.memory_space<vmem>>, vector<1x256xf32>
    %21 = vector.broadcast %20 : vector<1x256xf32> to vector<4x256xf32>
    %22 = arith.mulf %19, %21 : vector<4x256xf32>
    %c8 = arith.constant 8 : index
    %c0_9 = arith.constant 0 : index
    %23 = vector.load %arg6[%c8, %c0_9] : memref<40x256xf32, #tpu.memory_space<vmem>>, vector<4x256xf32>
    tpu.vector_store %arg6[%c8, %c0_9], %22 {strides = array<i32>} : memref<40x256xf32, #tpu.memory_space<vmem>>, vector<4x256xf32>,
    %24 = vector.extract_strided_slice %2 {offsets = [0, 255], sizes = [4, 1], strides = [1, 1]} : vector<4x256xf32> to vector<4x1xf32>
    %25 = vector.extract_strided_slice %2 {offsets = [0, 0], sizes = [4, 255], strides = [1, 1]} : vector<4x256xf32> to vector<4x255xf32>
    %26 = tpu.concatenate %24, %25 in 1 : vector<4x1xf32>, vector<4x255xf32> -> vector<4x256xf32>
    %c3 = arith.constant 3 : index
    %c0_10 = arith.constant 0 : index
    %27 = vector.load %arg3[%c3, %c0_10] : memref<9x256xf32, #tpu.memory_space<vmem>>, vector<1x256xf32>
    %28 = vector.broadcast %27 : vector<1x256xf32> to vector<4x256xf32>
    %29 = arith.mulf %26, %28 : vector<4x256xf32>
    %c12 = arith.constant 12 : index
    %c0_11 = arith.constant 0 : index
    %30 = vector.load %arg6[%c12, %c0_11] : memref<40x256xf32, #tpu.memory_space<vmem>>, vector<4x256xf32>
    tpu.vector_store %arg6[%c12, %c0_11], %29 {strides = array<i32>} : memref<40x256xf32, #tpu.memory_space<vmem>>, vector<4x256xf32>,
    %c4_12 = arith.constant 4 : index
    %c0_13 = arith.constant 0 : index
    %31 = vector.load %arg3[%c4_12, %c0_13] : memref<9x256xf32, #tpu.memory_space<vmem>>, vector<1x256xf32>
    %32 = vector.broadcast %31 : vector<1x256xf32> to vector<4x256xf32>
    %33 = arith.mulf %2, %32 : vector<4x256xf32>
    %c16 = arith.constant 16 : index
    %c0_14 = arith.constant 0 : index
    %34 = vector.load %arg6[%c16, %c0_14] : memref<40x256xf32, #tpu.memory_space<vmem>>, vector<4x256xf32>
    tpu.vector_store %arg6[%c16, %c0_14], %33 {strides = array<i32>} : memref<40x256xf32, #tpu.memory_space<vmem>>, vector<4x256xf32>,
    %35 = vector.extract_strided_slice %2 {offsets = [0, 1], sizes = [4, 255], strides = [1, 1]} : vector<4x256xf32> to vector<4x255xf32>
    %36 = vector.extract_strided_slice %2 {offsets = [0, 0], sizes = [4, 1], strides = [1, 1]} : vector<4x256xf32> to vector<4x1xf32>
    %37 = tpu.concatenate %35, %36 in 1 : vector<4x255xf32>, vector<4x1xf32> -> vector<4x256xf32>
    %c5 = arith.constant 5 : index
    %c0_15 = arith.constant 0 : index
    %38 = vector.load %arg3[%c5, %c0_15] : memref<9x256xf32, #tpu.memory_space<vmem>>, vector<1x256xf32>
    %39 = vector.broadcast %38 : vector<1x256xf32> to vector<4x256xf32>
    %40 = arith.mulf %37, %39 : vector<4x256xf32>
    %c20 = arith.constant 20 : index
    %c0_16 = arith.constant 0 : index
    %41 = vector.load %arg6[%c20, %c0_16] : memref<40x256xf32, #tpu.memory_space<vmem>>, vector<4x256xf32>
    tpu.vector_store %arg6[%c20, %c0_16], %40 {strides = array<i32>} : memref<40x256xf32, #tpu.memory_space<vmem>>, vector<4x256xf32>,
    %42 = vector.extract_strided_slice %2 {offsets = [0, 15], sizes = [4, 241], strides = [1, 1]} : vector<4x256xf32> to vector<4x241xf32>
    %43 = vector.extract_strided_slice %2 {offsets = [0, 0], sizes = [4, 15], strides = [1, 1]} : vector<4x256xf32> to vector<4x15xf32>
    %44 = tpu.concatenate %42, %43 in 1 : vector<4x241xf32>, vector<4x15xf32> -> vector<4x256xf32>
    %c6 = arith.constant 6 : index
    %c0_17 = arith.constant 0 : index
    %45 = vector.load %arg3[%c6, %c0_17] : memref<9x256xf32, #tpu.memory_space<vmem>>, vector<1x256xf32>
    %46 = vector.broadcast %45 : vector<1x256xf32> to vector<4x256xf32>
    %47 = arith.mulf %44, %46 : vector<4x256xf32>
    %c24 = arith.constant 24 : index
    %c0_18 = arith.constant 0 : index
    %48 = vector.load %arg6[%c24, %c0_18] : memref<40x256xf32, #tpu.memory_space<vmem>>, vector<4x256xf32>
    tpu.vector_store %arg6[%c24, %c0_18], %47 {strides = array<i32>} : memref<40x256xf32, #tpu.memory_space<vmem>>, vector<4x256xf32>,
    %49 = vector.extract_strided_slice %2 {offsets = [0, 16], sizes = [4, 240], strides = [1, 1]} : vector<4x256xf32> to vector<4x240xf32>
    %50 = vector.extract_strided_slice %2 {offsets = [0, 0], sizes = [4, 16], strides = [1, 1]} : vector<4x256xf32> to vector<4x16xf32>
    %51 = tpu.concatenate %49, %50 in 1 : vector<4x240xf32>, vector<4x16xf32> -> vector<4x256xf32>
    %c7 = arith.constant 7 : index
    %c0_19 = arith.constant 0 : index
    %52 = vector.load %arg3[%c7, %c0_19] : memref<9x256xf32, #tpu.memory_space<vmem>>, vector<1x256xf32>
    %53 = vector.broadcast %52 : vector<1x256xf32> to vector<4x256xf32>
    %54 = arith.mulf %51, %53 : vector<4x256xf32>
    %c28 = arith.constant 28 : index
    %c0_20 = arith.constant 0 : index
    %55 = vector.load %arg6[%c28, %c0_20] : memref<40x256xf32, #tpu.memory_space<vmem>>, vector<4x256xf32>
    tpu.vector_store %arg6[%c28, %c0_20], %54 {strides = array<i32>} : memref<40x256xf32, #tpu.memory_space<vmem>>, vector<4x256xf32>,
    %56 = vector.extract_strided_slice %2 {offsets = [0, 17], sizes = [4, 239], strides = [1, 1]} : vector<4x256xf32> to vector<4x239xf32>
    %57 = vector.extract_strided_slice %2 {offsets = [0, 0], sizes = [4, 17], strides = [1, 1]} : vector<4x256xf32> to vector<4x17xf32>
    %58 = tpu.concatenate %56, %57 in 1 : vector<4x239xf32>, vector<4x17xf32> -> vector<4x256xf32>
    %c8_21 = arith.constant 8 : index
    %c0_22 = arith.constant 0 : index
    %59 = vector.load %arg3[%c8_21, %c0_22] : memref<9x256xf32, #tpu.memory_space<vmem>>, vector<1x256xf32>
    %60 = vector.broadcast %59 : vector<1x256xf32> to vector<4x256xf32>
    %61 = arith.mulf %58, %60 : vector<4x256xf32>
    %c32 = arith.constant 32 : index
    %c0_23 = arith.constant 0 : index
    %62 = vector.load %arg6[%c32, %c0_23] : memref<40x256xf32, #tpu.memory_space<vmem>>, vector<4x256xf32>
    tpu.vector_store %arg6[%c32, %c0_23], %61 {strides = array<i32>} : memref<40x256xf32, #tpu.memory_space<vmem>>, vector<4x256xf32>,
    %cst = arith.constant 1.000000e+00 : f32
    %63 = vector.broadcast %cst : f32 to vector<1x256xf32>
    %c36 = arith.constant 36 : index
    %c0_24 = arith.constant 0 : index
    %64 = vector.load %arg6[%c36, %c0_24] : memref<40x256xf32, #tpu.memory_space<vmem>>, vector<1x256xf32>
    tpu.vector_store %arg6[%c36, %c0_24], %63 {strides = array<i32>} : memref<40x256xf32, #tpu.memory_space<vmem>>, vector<1x256xf32>,
    %cst_25 = arith.constant 0.000000e+00 : f32
    %65 = vector.broadcast %cst_25 : f32 to vector<3x256xf32>
    %c37 = arith.constant 37 : index
    %c0_26 = arith.constant 0 : index
    %66 = vector.load %arg6[%c37, %c0_26] : memref<40x256xf32, #tpu.memory_space<vmem>>, vector<3x256xf32>
    tpu.vector_store %arg6[%c37, %c0_26], %65 {strides = array<i32>} : memref<40x256xf32, #tpu.memory_space<vmem>>, vector<3x256xf32>,
    %c0_27 = arith.constant 0 : index
    %c0_28 = arith.constant 0 : index
    %67 = vector.load %arg2[%c0_27, %c0_28] : memref<8x40xbf16, #tpu.memory_space<vmem>>, vector<8x40xbf16>
    %c0_29 = arith.constant 0 : index
    %c0_30 = arith.constant 0 : index
    %68 = vector.load %arg6[%c0_29, %c0_30] : memref<40x256xf32, #tpu.memory_space<vmem>>, vector<40x256xf32>
    %69 = arith.truncf %68 : vector<40x256xf32> to vector<40x256xbf16>
    %cst_31 = arith.constant dense<0.000000e+00> : vector<8x256xf32>
    %70 = tpu.matmul %67, %69, %cst_31 {dimension_numbers = #tpu.dot_dimension_numbers<[1], [0], [0], [1], [0, 0, 1, 1], [], []>} : vector<8x40xbf16>, vector<40x256xbf16>, vector<8x256xf32> -> vector<8x256xf32>
    %cst_32 = arith.constant 0.000000e+00 : f32
    %71 = vector.broadcast %cst_32 : f32 to vector<8x256xf32>
    %72 = arith.maximumf %70, %71 : vector<8x256xf32>
    %c0_33 = arith.constant 0 : index
    %c0_34 = arith.constant 0 : index
    %c0_35 = arith.constant 0 : index
    %73 = vector.load %arg4[%c0_33, %c0_34, %c0_35] : memref<1x8x256xf32, #tpu.memory_space<vmem>>, vector<1x8x256xf32>
    %74 = vector.shape_cast %73 : vector<1x8x256xf32> to vector<8x256xf32>
    %75 = vector.shape_cast %72 : vector<8x256xf32> to vector<1x8x256xf32>
    tpu.vector_store %arg4[%c0_33, %c0_34, %c0_35], %75 {strides = array<i32>} : memref<1x8x256xf32, #tpu.memory_space<vmem>>, vector<1x8x256xf32>,
    %cst_36 = arith.constant dense<0.000000e+00> : vector<8xf32>
    %76 = vector.multi_reduction <add>, %72, %cst_36 [1] : vector<8x256xf32> to vector<8xf32>
    %77 = vector.shape_cast %76 : vector<8xf32> to vector<8x1xf32>
    %78 = arith.mulf %72, %72 : vector<8x256xf32>
    %cst_37 = arith.constant dense<0.000000e+00> : vector<8xf32>
    %79 = vector.multi_reduction <add>, %78, %cst_37 [1] : vector<8x256xf32> to vector<8xf32>
    %80 = vector.shape_cast %79 : vector<8xf32> to vector<8x1xf32>
    %81 = tpu.concatenate %77, %80 in 1 : vector<8x1xf32>, vector<8x1xf32> -> vector<8x2xf32>
    %c0_38 = arith.constant 0 : index
    %c0_39 = arith.constant 0 : index
    %c0_40 = arith.constant 0 : index
    %82 = vector.load %arg5[%c0_38, %c0_39, %c0_40] : memref<1x8x2xf32, #tpu.memory_space<vmem>>, vector<1x8x2xf32>
    %83 = vector.shape_cast %82 : vector<1x8x2xf32> to vector<8x2xf32>
    %84 = vector.shape_cast %81 : vector<8x2xf32> to vector<1x8x2xf32>
    tpu.vector_store %arg5[%c0_38, %c0_39, %c0_40], %84 {strides = array<i32>} : memref<1x8x2xf32, #tpu.memory_space<vmem>>, vector<1x8x2xf32>,
    return
  }
  func.func @transform_0(%arg0: i32) -> (i32, i32, i32) {
    %c0_i32 = arith.constant 0 : i32
    %c0_i32_0 = arith.constant 0 : i32
    %c0_i32_1 = arith.constant 0 : i32
    return %arg0, %c0_i32, %c0_i32_0 : i32, i32, i32
  }
  func.func @transform_1(%arg0: i32) -> (i32, i32) {
    %c0_i32 = arith.constant 0 : i32
    %c0_i32_0 = arith.constant 0 : i32
    %c0_i32_1 = arith.constant 0 : i32
    return %c0_i32, %c0_i32_0 : i32, i32
  }
  func.func @transform_2(%arg0: i32) -> (i32, i32) {
    %c0_i32 = arith.constant 0 : i32
    %c0_i32_0 = arith.constant 0 : i32
    %c0_i32_1 = arith.constant 0 : i32
    return %c0_i32, %c0_i32_0 : i32, i32
  }
  func.func @transform_3(%arg0: i32) -> (i32, i32, i32) {
    %c0_i32 = arith.constant 0 : i32
    %c0_i32_0 = arith.constant 0 : i32
    %c0_i32_1 = arith.constant 0 : i32
    return %arg0, %c0_i32, %c0_i32_0 : i32, i32, i32
  }
  func.func @transform_4(%arg0: i32) -> (i32, i32, i32) {
    %c0_i32 = arith.constant 0 : i32
    %c0_i32_0 = arith.constant 0 : i32
    %c0_i32_1 = arith.constant 0 : i32
    return %arg0, %c0_i32, %c0_i32_0 : i32, i32, i32
  }
}

</mosaic_0001>

<bundles_post_ra>
// kernel: simpleblock_forward.3
= control target key start
LH: loop header
LB: loop body
LE: loop exit
PB: predicated region body
PF: predicated region fallthrough
CT: control target
= control target key end

     0   :  { %s298_s12 = smov 0   ;;  %s321_s0 = inlined_call_operand.vmem [shape: f32[2,8,256], index: 0, kind: input, shape index: {}, may-alias: {0,3}]   ;;  %s322_s1 = inlined_call_operand.vmem [shape: f32[8,1], index: 1, kind: input, shape index: {}]   ;;  %s323_s2 = inlined_call_operand.vmem [shape: f32[8,1], index: 2, kind: input, shape index: {}]   ;;  %s324_s3 = inlined_call_operand.vmem [shape: f32[2,8,256], index: 3, kind: output, shape index: {}, may-alias: {0,3}]  }
   0x1 LB: > { %s246_s13 = sadd.s32 4294967295, %s275_s12   ;;  %p250_p0 = scmp.ge.s32.totalorder %s275_s12, 1  ;;  %s275_s12 = sphi %s298_s12, %s13_s12  }
   0x2   : > { %p137_p1 = scmp.lt.s32.totalorder %s275_s12, 3 }
   0x4   : > { %p138_p2 = pnand %p250_p0, %p137_p1 }
   0x5   : > { %p161_p3 = scmp.lt.s32.totalorder (!%p138_p2), %s246_s13, 1 }
   0x6   : > { %141 = sbr.rel (%p138_p2) target bundleno = 144 (0x90), region = 32 }
   0xb   : > { %v173_v0 = vld [vmem:[%s322_s1] sm:$0xff]  ;;  %v277_v1 = vmov 0   ;;  %s326_s13 = smov (!%p161_p3, %s246_s13), 1 }
   0xc   : > { %268 = vset.pattern.permute.xlu0 %v277_v1  ;;  %v181_v2 = vld [vmem:[%s323_s2] sm:$0xff]  ;;  %s257_s18 = sshll.u32 %s326_s13, 4 }
   0xd   : > { %176 = vperm.xlu0 %268, %v173_v0   ;;  %s165_s21 = scalar_lea.vmem %s321_s0, %s257_s18  ;;  %s170_s24 = scalar_lea.vmem %s324_s3, %s257_s18 }
   0xe   : > { %v171_v4 = vld [vmem:[%s165_s21] sm:$0xff]  ;;  %v172_v5 = vld [vmem:[%s165_s21 + $0x8] sm:$0xff] }
  0x11   : > { %184 = vperm.xlu0 %268, %v181_v2  }
  0x88   : > { %v177_v3 = vpop.permute.xlu0 %176 }
  0x89   : > { %v179_v6 = vsub.f32 %v171_v4, %v177_v3  ;;  %v180_v7 = vsub.f32 %v172_v5, %v177_v3 }
  0x8c   : > { %v185_v8 = vpop.permute.xlu0 %184 }
  0x8d   : > { %v187_v9 = vmul.f32 %v185_v8, %v179_v6  ;;  %v188_v10 = vmul.f32 %v185_v8, %v180_v7 }
  0x8f   : > { %189 = vst [vmem:[%s170_s24] sm:$0xff] %v187_v9  ;;  %190 = vst [vmem:[%s170_s24 + $0x8] sm:$0xff] %v188_v10 }
  0x90 PF: > { %s13_s12 = sadd.s32 1, %s275_s12  }
  0x91   : > { %p10_p4 = scmp.ge.s32.totalorder %s13_s12, 4  }
  0x93   :  { %12 = sbr.rel (!%p10_p4) target bundleno = 1 (0x1), region = 62 }

// kernel: simpleblock_forward.2
= control target key start
LH: loop header
LB: loop body
LE: loop exit
PB: predicated region body
PF: predicated region fallthrough
CT: control target
= control target key end

     0   :  { %s778_s15 = smov 0   ;;  %s896_s0 = inlined_call_operand.vmem [shape: bf16[2,4,256], index: 0, kind: input, shape index: {}]   ;;  %s897_s1 = inlined_call_operand.vmem [shape: bf16[8,40], index: 1, kind: input, shape index: {}]   ;;  %s898_s2 = inlined_call_operand.vmem [shape: f32[9,256], index: 2, kind: input, shape index: {}]   ;;  %s899_s3 = inlined_call_operand.vmem [shape: f32[2,8,256], index: 3, kind: output, shape index: {0}]   ;;  %s900_s4 = inlined_call_operand.vmem [shape: f32[2,8,2], index: 4, kind: output, shape index: {1}]  }
   0x1 LB: > { %s651_s16 = sadd.s32 4294967295, %s740_s15   ;;  %p655_p0 = scmp.ge.s32.totalorder %s740_s15, 1  ;;  %s740_s15 = sphi %s778_s15, %s15_s15  }
   0x2   : > { %p165_p1 = scmp.lt.s32.totalorder %s740_s15, 3 }
   0x4   : > { %p166_p2 = pnand %p655_p0, %p165_p1 }
   0x5   : > { %p195_p3 = scmp.lt.s32.totalorder (!%p166_p2), %s651_s16, 1  ;;  %s744_s23 = smov (!%p166_p2), 112  }
   0x6   : > { %169 = sbr.rel (%p166_p2) target bundleno = 510 (0x1fe), region = 32  ;;  %s745_s24 = smov (!%p166_p2), 111  }
   0x7   : > { %s746_s25 = smov (!%p166_p2), 113   ;;  %s747_s26 = smov (!%p166_p2), 127  }
   0x8   : > { %s748_s27 = smov (!%p166_p2), 1   ;;  %s749_s28 = smov (!%p166_p2), 16  }
   0x9   : > { %s750_s29 = smov (!%p166_p2), 15   ;;  %s751_s30 = smov (!%p166_p2), 17  }
   0xb   : > { %v226_v0 = vlaneseq  ;;  %s902_s16 = smov (!%p195_p3, %s651_s16), 1  ;;  %v742_v2 = vmov 1.0   ;;  %v664_v5 = vld [vmem:[%s898_s2 + $0x4] ss:$8 sm:$0x3]  ;;  %v743_v12 = vmov 0.0  }
   0xc   : > { %s673_s17 = sshll.u32 %s902_s16, 2  ;;  %480 = vst [vmem:[#allocation2 + $0x48] sm:$0xe0] %v743_v12  ;;  %479 = vst [vmem:[#allocation2 + $0x40] sm:$0xe0] %v743_v12  ;;  %v752_v17 = vmov 0  }
   0xd   : > { %v227_v1 = vshrl.u32 %v226_v0, 7  ;;  %vm474_vm0 = vcmp.lt.s32.totalorder %v226_v0, 256  ;;  %s199_s20 = scalar_lea.vmem %s896_s0, %s673_s17  ;;  %541 = vmatprep.mubr.bf16.mxu0 %v752_v17  ;;  %vm416_vm1 = vcmask 916480   ;;  %v667_v18 = vld [vmem:[%s898_s2 + $0x7] ss:$8 sm:$0x3] }
   0xe   : > { %477 = vst.msk [vmem:[#allocation2 + $0x44] ss:$8 sm:$0x3] %vm474_vm0, %v742_v2  ;;  %v210_v3 = vld [vmem:[%s199_s20] sm:$0xf]  ;;  %vm449_vm2 = vcmask 908288  }
   0xf   : > { %v211_v4 = vunpack.c.l.bf16 %v210_v3  ;;  %v795_v6 = vsub.s32 0, %v227_v1  ;;  %v797_v7 = vsub.s32 1, %v227_v1  ;;  %v668_v19 = vld [vmem:[%s898_s2 + $0x10] ss:$8 sm:$0x3]  ;;  %vm389_vm3 = vcmask 924672  }
  0x10   : > { %v666_v20 = vld [vmem:[%s898_s2 + $0x6] ss:$8 sm:$0x3]  ;;  %v665_v21 = vld [vmem:[%s898_s2 + $0x5] ss:$8 sm:$0x3] }
  0x11   : > { %v213_v8 = vcombine.high %v211_v4, %v211_v4  ;;  %v339_v9 = vrot.slane %v664_v5, %v795_v6  ;;  %v343_v10 = vrot.slane %v664_v5, %v797_v7  ;;  %vm356_vm4 = vcmask 1039360   ;;  %v816_v22 = vld [vmem:[%s898_s2 + $0x3] ss:$8 sm:$0x3] }
  0x12   : > { %v428_v23 = vrot.slane %v667_v18, %v795_v6  ;;  %v432_v24 = vrot.slane %v667_v18, %v797_v7  ;;  %v461_v25 = vrot.slane %v668_v19, %v795_v6  ;;  %v465_v26 = vrot.slane %v668_v19, %v797_v7  ;;  %v829_v31 = vld [vmem:[%s898_s2 + $0x1] ss:$8 sm:$0x3]  ;;  %v834_v32 = vld [vmem:[%s898_s2 + $0x2] ss:$8 sm:$0x3] }
  0x13   : > { %v704_v11 = vpack.i.bf16 %v213_v8, %v211_v4  ;;  %v344_v13 = vcombine.low %v339_v9, %v343_v10  ;;  %v719_v15 = vpack.i.bf16 %v211_v4, %v213_v8  ;;  %v401_v27 = vrot.slane %v666_v20, %v795_v6  ;;  %v855_v49 = vld [vmem:[%s898_s2] ss:$8 sm:$0x3] }
  0x14   : > { %v405_v28 = vrot.slane %v666_v20, %v797_v7  ;;  %v368_v29 = vrot.slane %v665_v21, %v795_v6  ;;  %v372_v30 = vrot.slane %v665_v21, %v797_v7  ;;  %vm305_vm5 = vcmask 7168  }
  0x15   : > { %705 = vrot.lane.b32.xlu1 %v704_v11, %s744_s23  ;;  %695 = vrot.lane.b32.xlu0 %v704_v11, %s745_s24  ;;  %v346_v14 = vmul.f32 %v344_v13, %v211_v4  ;;  %v316_v35 = vrot.slane %v816_v22, %v795_v6  ;;  %v320_v36 = vrot.slane %v816_v22, %v797_v7  ;;  %vm245_vm6 = vcmask 130048  }
  0x16   : > { %v256_v41 = vrot.slane %v829_v31, %v795_v6  ;;  %v260_v42 = vrot.slane %v829_v31, %v797_v7  ;;  %v289_v43 = vrot.slane %v834_v32, %v795_v6  ;;  %v293_v44 = vrot.slane %v834_v32, %v797_v7 }
  0x17   : > { %v348_v16 = vcombine.high %v346_v14, %v346_v14  ;;  %350 = vst [vmem:[#allocation2 + $0x20] sm:$0xf] %v346_v14  ;;  %vm278_vm7 = vcmask 121856   ;;  %vm219_vm8 = vcmask 138240   ;;  %v229_v62 = vrot.slane %v855_v49, %v795_v6 }
  0x18   : > { %v233_v17 = vrot.slane %v855_v49, %v797_v7  ;;  %vm502_vm9 = vcmask 1043456   ;;  %vm498_vm10 = vcmask 326656   ;;  %vm563_vm11 = vcmask 15360  }
  0x19   : > { %710 = vrot.lane.b32.xlu1 %v704_v11, %s746_s25  ;;  %700 = vrot.lane.b32.xlu0 %v704_v11, %s747_s26  ;;  %351 = vst [vmem:[#allocation2 + $0x28] sm:$0xf] %v348_v16  ;;  %s674_s25 = sshll.u32 %s902_s16, 4 }
  0x1d   : > { %720 = vrot.lane.b32.xlu1 %v719_v15, %s748_s27  ;;  %715 = vrot.lane.b32.xlu0 %v719_v15, %s749_s28  ;;  %s204_s28 = scalar_lea.vmem %s899_s3, %s674_s25 }
  0x21   : > { %730 = vrot.lane.b32.xlu1 %v719_v15, %s750_s29  ;;  %725 = vrot.lane.b32.xlu0 %v719_v15, %s751_s30  ;;  %s660_s29 = sshll.u32 %s902_s16, 3 }
  0x22   : > { %s208_s6 = scalar_lea.vmem %s900_s4, %s660_s29 }
  0x87   : > { %v706_v33 = vpop.permute.xlu1 %705  ;;  %v696_v34 = vpop.permute.xlu0 %695 }
  0x88   : > { %v708_v37 = vunpack.i.h.bf16 %v706_v33  ;;  %v707_v38 = vunpack.i.l.bf16 %v706_v33  ;;  %v698_v39 = vunpack.i.h.bf16 %v696_v34  ;;  %v697_v40 = vunpack.i.l.bf16 %v696_v34 }
  0x8a   : > { %v417_v45 = vsel %vm416_vm1, %v707_v38, %v708_v37  ;;  %v421_v46 = vsel %vm416_vm1, %v708_v37, %v707_v38  ;;  %v450_v47 = vsel %vm449_vm2, %v697_v40, %v698_v39  ;;  %v454_v48 = vsel %vm449_vm2, %v698_v39, %v697_v40 }
  0x8b   : > { %v435_v50 = vmul.f32 %v428_v23, %v417_v45  ;;  %v436_v51 = vmul.f32 %v432_v24, %v421_v46  ;;  %v468_v52 = vmul.f32 %v461_v25, %v450_v47  ;;  %v469_v53 = vmul.f32 %v465_v26, %v454_v48  ;;  %v711_v54 = vpop.permute.xlu1 %710  ;;  %v701_v55 = vpop.permute.xlu0 %700 }
  0x8c   : > { %v713_v56 = vunpack.i.h.bf16 %v711_v54  ;;  %v712_v57 = vunpack.i.l.bf16 %v711_v54  ;;  %v703_v58 = vunpack.i.h.bf16 %v701_v55  ;;  %v702_v59 = vunpack.i.l.bf16 %v701_v55 }
  0x8d   : > { %v439_v60 = vrot.slane %v435_v50, 4  ;;  %v440_v61 = vrot.slane %v436_v51, 4  ;;  %470 = vst [vmem:[#allocation2 + $0x40] sm:$0xf] %v468_v52  ;;  %471 = vst [vmem:[#allocation2 + $0x48] sm:$0xf] %v469_v53 }
  0x8e   : > { %v390_v63 = vsel %vm389_vm3, %v712_v57, %v713_v56  ;;  %v394_v0 = vsel %vm389_vm3, %v713_v56, %v712_v57  ;;  %v357_v1 = vsel %vm356_vm4, %v702_v59, %v703_v58  ;;  %v361_v2 = vsel %vm356_vm4, %v703_v58, %v702_v59  ;;  %v481_v59 = vld [vmem:[%s897_s1] sm:$0xf] }
  0x8f   : > { %443 = vst [vmem:[#allocation2 + $0x30] sm:$0xf0] %v439_v60  ;;  %444 = vst [vmem:[#allocation2 + $0x38] sm:$0xf0] %v440_v61  ;;  %v408_v3 = vmul.f32 %v401_v27, %v390_v63  ;;  %v409_v4 = vmul.f32 %v405_v28, %v394_v0  ;;  %v375_v5 = vmul.f32 %v368_v29, %v357_v1  ;;  %v721_v9 = vpop.permute.xlu1 %720  ;;  %v716_v10 = vpop.permute.xlu0 %715 }
  0x90   : > { %v376_v8 = vmul.f32 %v372_v30, %v361_v2  ;;  %v723_v11 = vunpack.i.h.bf16 %v721_v9  ;;  %v722_v12 = vunpack.i.l.bf16 %v721_v9  ;;  %v718_v13 = vunpack.i.h.bf16 %v716_v10 }
  0x91   : > { %v717_v14 = vunpack.i.l.bf16 %v716_v10  ;;  %410 = vst [vmem:[#allocation2 + $0x30] sm:$0xf] %v408_v3  ;;  %411 = vst [vmem:[#allocation2 + $0x38] sm:$0xf] %v409_v4  ;;  %v379_v15 = vrot.slane %v375_v5, 4 }
  0x92   : > { %v380_v16 = vrot.slane %v376_v8, 4  ;;  %v306_v18 = vsel %vm305_vm5, %v723_v11, %v722_v12  ;;  %v309_v19 = vsel %vm305_vm5, %v722_v12, %v723_v11 }
  0x93   : > { %v246_v20 = vsel %vm245_vm6, %v718_v13, %v717_v14  ;;  %v249_v21 = vsel %vm245_vm6, %v717_v14, %v718_v13  ;;  %383 = vst [vmem:[#allocation2 + $0x20] sm:$0xf0] %v379_v15  ;;  %v323_v22 = vmul.f32 %v316_v35, %v309_v19  ;;  %v324_v23 = vmul.f32 %v320_v36, %v306_v18  ;;  %v731_v26 = vpop.permute.xlu1 %730  ;;  %v726_v27 = vpop.permute.xlu0 %725 }
  0x94   : > { %384 = vst [vmem:[#allocation2 + $0x28] sm:$0xf0] %v380_v16  ;;  %v263_v24 = vmul.f32 %v256_v41, %v249_v21  ;;  %v264_v25 = vmul.f32 %v260_v42, %v246_v20  ;;  %v733_v28 = vunpack.i.h.bf16 %v731_v26  ;;  %v732_v29 = vunpack.i.l.bf16 %v731_v26  ;;  %v491_v39 = vld [vmem:[#allocation2 + $0x48] sm:$0xff]  ;;  %v490_v40 = vld [vmem:[#allocation2 + $0x40] sm:$0xff] }
  0x95   : > { %v728_v30 = vunpack.i.h.bf16 %v726_v27  ;;  %v727_v31 = vunpack.i.l.bf16 %v726_v27  ;;  %v327_v33 = vrot.slane %v323_v22, 4  ;;  %v328_v34 = vrot.slane %v324_v23, 4 }
  0x96   : > { %v267_v37 = vrot.slane %v263_v24, 4  ;;  %v268_v38 = vrot.slane %v264_v25, 4  ;;  %v279_v45 = vsel %vm278_vm7, %v733_v28, %v732_v29  ;;  %v282_v46 = vsel %vm278_vm7, %v732_v29, %v733_v28 }
  0x97   : > { %v220_v35 = vsel %vm219_vm8, %v728_v30, %v727_v31  ;;  %v223_v36 = vsel %vm219_vm8, %v727_v31, %v728_v30  ;;  %331 = vst [vmem:[#allocation2 + $0x10] sm:$0xf0] %v327_v33  ;;  %332 = vst [vmem:[#allocation2 + $0x18] sm:$0xf0] %v328_v34  ;;  %v296_v41 = vmul.f32 %v289_v43, %v282_v46 }
  0x98   : > { %271 = vst [vmem:[#allocation2] sm:$0xf0] %v267_v37  ;;  %272 = vst [vmem:[#allocation2 + $0x8] sm:$0xf0] %v268_v38  ;;  %v297_v42 = vmul.f32 %v293_v44, %v279_v45  ;;  %v236_v47 = vmul.f32 %v229_v62, %v223_v36  ;;  %v237_v48 = vmul.f32 %v233_v17, %v220_v35  ;;  %v489_v51 = vld [vmem:[#allocation2 + $0x38] sm:$0xff]  ;;  %v488_v43 = vld [vmem:[#allocation2 + $0x30] sm:$0xff] }
  0x99   : > { %v497_v49 = vpack.c.bf16 %v491_v39, %v491_v39  ;;  %v496_v50 = vpack.c.bf16 %v490_v40, %v490_v40  ;;  %298 = vst [vmem:[#allocation2 + $0x10] sm:$0xf] %v296_v41 }
  0x9a   : > { %299 = vst [vmem:[#allocation2 + $0x18] sm:$0xf] %v297_v42  ;;  %238 = vst [vmem:[#allocation2] sm:$0xf] %v236_v47  ;;  %v486_v6 = vld [vmem:[#allocation2 + $0x20] sm:$0xff] }
  0x9b   : > { %239 = vst [vmem:[#allocation2 + $0x8] sm:$0xf] %v237_v48  ;;  %669 = vmatprep.subr.msk.bf16.mxu0 %vm502_vm9, %v497_v49  ;;  %v504_v52 = vsel %vm502_vm9, %v496_v50, 0  ;;  %v487_v53 = vld [vmem:[#allocation2 + $0x28] sm:$0xff]  ;;  %v494_v32 = vpack.c.bf16 %v488_v43, %v486_v6 }
  0x9c   : > { %520 = vmatpush1.bf16.msra.mxu0 %v504_v52  ;;  %v495_v7 = vpack.c.bf16 %v489_v51, %v487_v53 }
  0x9e   : > { %521 = vmatprep.subr.bf16.mxu0 %v495_v7 }
  0xa0   : > { %522 = vmatpush1.bf16.msra.mxu0 %v494_v32  ;;  %v484_v57 = vld [vmem:[#allocation2 + $0x10] sm:$0xff] }
  0xa1   : > { %v485_v54 = vld [vmem:[#allocation2 + $0x18] sm:$0xff]  ;;  %v482_v55 = vld [vmem:[#allocation2] sm:$0xff] }
  0xa2   : > { %v483_v44 = vld [vmem:[#allocation2 + $0x8] sm:$0xff]  ;;  %v492_v58 = vpack.c.bf16 %v484_v57, %v482_v55 }
  0xa3   : > { %v493_v56 = vpack.c.bf16 %v485_v54, %v483_v44 }
  0xa5   : > { %523 = vmatprep.subr.bf16.mxu0 %v493_v56 }
  0xa6   : > { %524 = vmatpush1.bf16.msra.mxu0 %v492_v58 }
  0xa9   : > { %670 = vmatmul.mubr.msk.bf16.vlgmr.msra.gmra.mxu0 %vm498_vm10, %v481_v59 }
 0x169   : > { %v543_v60 = vpop.f32.mrf.mxu0 }
 0x16a   : > { %v550_v61 = vmax.f32 %v543_v60, 0.0 }
 0x16b   : > { %v545_v62 = vpop.f32.mrf.mxu0 }
 0x16c   : > { %552 = vst [vmem:[%s204_s28] sm:$0xff] %v550_v61  ;;  %v551_v63 = vmax.f32 %v545_v62, 0.0  ;;  %v557_v2 = vmul.f32 %v550_v61, %v550_v61 }
 0x16d   : > { %v547_v0 = vpop.f32.mrf.mxu0 }
 0x16e   : > { %553 = vst [vmem:[%s204_s28 + $0x8] sm:$0xff] %v551_v63  ;;  %v554_v1 = vadd.f32 %v551_v63, %v550_v61  ;;  %v558_v3 = vmul.f32 %v551_v63, %v551_v63 }
 0x16f   : > { %v548_v4 = vpop.f32.mrf.mxu0 }
 0x170   : > { %555 = vadd.xlane.f32.xlu0 %v554_v1  ;;  %v559_v5 = vadd.f32 %v558_v3, %v557_v2 }
 0x172   : > { %560 = vadd.xlane.f32.xlu1 %v559_v5 }
 0x1f9   : > { %v556_v8 = vpop.xlane.xlu0 %555 }
 0x1fb   : > { %v561_v9 = vpop.xlane.xlu1 %560 }
 0x1fc   : > { %v562_v10 = vsel %vm305_vm5, %v556_v8, %v561_v9 }
 0x1fd   : > { %564 = vst.msk [vmem:[%s208_s6] sm:$0xff] %vm563_vm11, %v562_v10 }
 0x1fe PF: > { %s15_s15 = sadd.s32 1, %s740_s15  }
 0x1ff   : > { %p12_p4 = scmp.ge.s32.totalorder %s15_s15, 4  }
 0x201   :  { %14 = sbr.rel (!%p12_p4) target bundleno = 1 (0x1), region = 83 }

</bundles_post_ra>
